<compile_context>
chip_gen: v7x
topology: tpu7x:2x2x1
jax: 0.10.0
libtpu: 0.0.40
codegen_flags: <defaults>
</compile_context>

<pallas_src>
import functools

import jax
import jax.numpy as jnp
from jax import lax
from jax.experimental import pallas as pl
from jax.experimental.pallas import tpu as pltpu

_EPS = 1e-12           # torch.nn.functional.normalize default eps
_EPS2 = _EPS * _EPS    # max(sqrt(s), eps) == sqrt(max(s, eps^2))


def _round_up(x, m):
    return ((x + m - 1) // m) * m


# --------------------------------------------------------------------------
# Pre-pass kernels: per-row inverse L2 norms.
# --------------------------------------------------------------------------
def _row_inv_norm_kernel(x_ref, out_ref):
    """inv norm laid out as a column: out[r, 0] = 1 / max(||x_r||, eps)."""
    x = x_ref[...].astype(jnp.float32)
    ssq = jnp.sum(x * x, axis=-1, keepdims=True)               # (TM, 1)
    out_ref[...] = lax.rsqrt(jnp.maximum(ssq, jnp.float32(_EPS2)))


def _col_inv_norm_kernel(x_ref, out_ref, *, inv_temp):
    """inv norm laid out along lanes: out[0, r] = inv_temp / max(||x_r||, eps).

    The (1, D) ones-matmul produces the lane-major (1, TN) layout directly on
    the MXU, avoiding a sublane->lane relayout in the hot loop.
    """
    x = x_ref[...].astype(jnp.float32)                          # (TN, D)
    ones = jnp.ones((1, x.shape[-1]), jnp.float32)
    ssq = lax.dot_general(ones, x * x,
                          dimension_numbers=(((1,), (1,)), ((), ())),
                          preferred_element_type=jnp.float32)   # (1, TN)
    inv = lax.rsqrt(jnp.maximum(ssq, jnp.float32(_EPS2)))
    out_ref[...] = inv * jnp.float32(inv_temp)


# --------------------------------------------------------------------------
# Main fused similarity + cross-entropy kernel (online logsumexp over columns).
# --------------------------------------------------------------------------
def _contrastive_kernel(img_ref, txt_ref, inv_img_ref, inv_txt_ref, out_ref,
                        m_s, l_s, d_s, *, tile_m, tile_n, n_txt, n_txt_pad):
    i = pl.program_id(0)
    j = pl.program_id(1)
    nj = pl.num_programs(1)

    @pl.when(j == 0)
    def _init():
        m_s[...] = jnp.full(m_s.shape, -jnp.inf, jnp.float32)
        l_s[...] = jnp.zeros(l_s.shape, jnp.float32)
        d_s[...] = jnp.zeros(d_s.shape, jnp.float32)

    # MXU contraction in the operands' native dtype; f32 accumulation.
    # Transposed-RHS contraction -> no explicit txt.T materialization.
    s = lax.dot_general(img_ref[...], txt_ref[...],
                        dimension_numbers=(((1,), (1,)), ((), ())),
                        preferred_element_type=jnp.float32)     # (TM, TN)

    # rank-1 post-scale: row inv-norm * (col inv-norm with 1/temperature folded)
    logits = s * inv_img_ref[...] * inv_txt_ref[...]

    row = i * tile_m + lax.broadcasted_iota(jnp.int32, (tile_m, tile_n), 0)
    col = j * tile_n + lax.broadcasted_iota(jnp.int32, (tile_m, tile_n), 1)

    # diagonal logit (label == global row index) contribution of this column block
    d_s[...] += jnp.sum(jnp.where(col == row, logits, 0.0), axis=-1, keepdims=True)

    if n_txt_pad != n_txt:  # static: only emit the mask when padding exists
        logits = jnp.where(col < n_txt, logits, -jnp.inf)

    # online logsumexp accumulation over column blocks
    m_new = jnp.maximum(m_s[...], jnp.max(logits, axis=-1, keepdims=True))
    alpha = jnp.exp(m_s[...] - m_new)
    l_s[...] = alpha * l_s[...] + jnp.sum(jnp.exp(logits - m_new),
                                          axis=-1, keepdims=True)
    m_s[...] = m_new

    @pl.when(j == nj - 1)
    def _finalize():
        # per-row CE loss: logsumexp_j(logits) - logits[r, r]
        out_ref[...] = (m_s[...] + jnp.log(l_s[...])) - d_s[...]


# --------------------------------------------------------------------------
# Final masked mean over the batch.
# --------------------------------------------------------------------------
def _mean_loss_kernel(per_row_ref, out_ref, *, n_valid):
    x = per_row_ref[...]                                        # (N_pad, 1) f32
    if per_row_ref.shape[0] != n_valid:  # static
        idx = lax.broadcasted_iota(jnp.int32, x.shape, 0)
        x = jnp.where(idx < n_valid, x, 0.0)
    out_ref[...] = jnp.sum(x, axis=0, keepdims=True) * jnp.float32(1.0 / n_valid)


# --------------------------------------------------------------------------
# Wrapper
# --------------------------------------------------------------------------
def contrastive_loss(image_features, text_features, temperature=1.0,
                     *, tile_m=None, tile_n=None):
    """image_features: [N_img, D], text_features: [N_txt, D] -> scalar loss."""
    n_img, d = image_features.shape
    n_txt, d2 = text_features.shape
    assert d == d2, "embedding dims must match"
    assert n_img <= n_txt, "labels arange(N_img) require N_img <= N_txt"

    # MXU-aligned tiles (256) for large problems; shrink to the (8,128)-legal
    # minimum for small ones so tiny batches don't over-pad.
    if tile_m is None:
        tile_m = 256 if n_img >= 256 else _round_up(n_img, 8)
    if tile_n is None:
        tile_n = 256 if n_txt >= 256 else _round_up(n_txt, 128)

    n_img_pad = _round_up(n_img, tile_m)
    n_txt_pad = _round_up(n_txt, tile_n)

    img = image_features
    txt = text_features
    if n_img_pad != n_img:
        img = jnp.pad(img, ((0, n_img_pad - n_img), (0, 0)))
    if n_txt_pad != n_txt:
        txt = jnp.pad(txt, ((0, n_txt_pad - n_txt), (0, 0)))

    # --- pre-pass: per-row inverse norms (computed once) --------------------
    inv_img = pl.pallas_call(
        _row_inv_norm_kernel,
        out_shape=jax.ShapeDtypeStruct((n_img_pad, 1), jnp.float32),
        grid=(n_img_pad // tile_m,),
        in_specs=[pl.BlockSpec((tile_m, d), lambda i: (i, 0))],
        out_specs=pl.BlockSpec((tile_m, 1), lambda i: (i, 0)),
        compiler_params=pltpu.CompilerParams(dimension_semantics=("parallel",)),
    )(img)

    inv_txt = pl.pallas_call(
        functools.partial(_col_inv_norm_kernel, inv_temp=1.0 / float(temperature)),
        out_shape=jax.ShapeDtypeStruct((1, n_txt_pad), jnp.float32),
        grid=(n_txt_pad // tile_n,),
        in_specs=[pl.BlockSpec((tile_n, d), lambda j: (j, 0))],
        out_specs=pl.BlockSpec((1, tile_n), lambda j: (0, j)),
        compiler_params=pltpu.CompilerParams(dimension_semantics=("parallel",)),
    )(txt)

    # --- fused similarity + cross-entropy ------------------------------------
    kernel = functools.partial(_contrastive_kernel, tile_m=tile_m, tile_n=tile_n,
                               n_txt=n_txt, n_txt_pad=n_txt_pad)
    per_row = pl.pallas_call(
        kernel,
        out_shape=jax.ShapeDtypeStruct((n_img_pad, 1), jnp.float32),
        grid=(n_img_pad // tile_m, n_txt_pad // tile_n),
        in_specs=[
            pl.BlockSpec((tile_m, d), lambda i, j: (i, 0)),   # image block
            pl.BlockSpec((tile_n, d), lambda i, j: (j, 0)),   # text block
            pl.BlockSpec((tile_m, 1), lambda i, j: (i, 0)),   # inv img norms
            pl.BlockSpec((1, tile_n), lambda i, j: (0, j)),   # inv txt norms / T
        ],
        out_specs=pl.BlockSpec((tile_m, 1), lambda i, j: (i, 0)),
        scratch_shapes=[pltpu.VMEM((tile_m, 1), jnp.float32),   # running max
                        pltpu.VMEM((tile_m, 1), jnp.float32),   # running sum
                        pltpu.VMEM((tile_m, 1), jnp.float32)],  # diagonal logit
        compiler_params=pltpu.CompilerParams(
            dimension_semantics=("parallel", "arbitrary"),
            vmem_limit_bytes=64 * 1024 * 1024),
    )(img, txt, inv_img, inv_txt)

    # --- mean over the (valid) batch -----------------------------------------
    loss = pl.pallas_call(
        functools.partial(_mean_loss_kernel, n_valid=n_img),
        out_shape=jax.ShapeDtypeStruct((1, 1), jnp.float32),
    )(per_row)
    return loss[0, 0]


# --------------------------------------------------------------------------
# Reference + demo
# --------------------------------------------------------------------------
def _reference_loss(image_features, text_features, temperature=1.0):
    def _norm(x):
        n = jnp.sqrt(jnp.sum(x * x, axis=-1, keepdims=True))
        return x / jnp.maximum(n, _EPS)
    logits = jnp.matmul(_norm(image_features), _norm(text_features).T) / temperature
    b = logits.shape[0]
    lse = jax.nn.logsumexp(logits, axis=-1)
    diag = logits[jnp.arange(b), jnp.arange(b)]
    return jnp.mean(lse - diag)


if __name__ == "__main__":
    key = jax.random.PRNGKey(0)
    k1, k2 = jax.random.split(key)

    batch, hidden = 8, 32
    temperature = 0.5
    image_features = jax.random.normal(k1, (batch, hidden), dtype=jnp.float32)
    text_features = jax.random.normal(k2, (batch, hidden), dtype=jnp.float32)

    loss = contrastive_loss(image_features, text_features, temperature=temperature)
    loss = jax.block_until_ready(loss)

    ref = _reference_loss(image_features, text_features, temperature=temperature)
    assert loss.shape == ()
    assert jnp.allclose(loss, ref, atol=1e-4, rtol=1e-4), (float(loss), float(ref))

    print("KERNEL_OK")
</pallas_src>

<mosaic_0001>
module attributes {stable_mosaic.version = 11 : i64} {
  func.func @_row_inv_norm_kernel(%arg0: i32, %arg1: memref<8x32xf32, #tpu.memory_space<vmem>>, %arg2: memref<8x1xf32, #tpu.memory_space<vmem>>) attributes {dimension_semantics = [#tpu.dimension_semantics<parallel>], iteration_bounds = array<i64: 1>, scalar_prefetch = 0 : i64, scratch_operands = 0 : i64, tpu.core_type = #tpu.core_type<tc>, window_params = [{transform_indices = @transform_0, window_bounds = array<i64: 8, 32>}, {transform_indices = @transform_1, window_bounds = array<i64: 8, 1>}]} {
    %c0 = arith.constant 0 : index
    %c0_0 = arith.constant 0 : index
    %0 = vector.load %arg1[%c0, %c0_0] : memref<8x32xf32, #tpu.memory_space<vmem>>, vector<8x32xf32>
    %1 = arith.mulf %0, %0 : vector<8x32xf32>
    %cst = arith.constant dense<0.000000e+00> : vector<8xf32>
    %2 = vector.multi_reduction <add>, %1, %cst [1] : vector<8x32xf32> to vector<8xf32>
    %3 = vector.shape_cast %2 : vector<8xf32> to vector<8x1xf32>
    %cst_1 = arith.constant 1.000000e-24 : f32
    %4 = vector.broadcast %cst_1 : f32 to vector<8x1xf32>
    %5 = arith.maximumf %3, %4 : vector<8x1xf32>
    %6 = math.rsqrt %5 : vector<8x1xf32>
    %c0_2 = arith.constant 0 : index
    %c0_3 = arith.constant 0 : index
    %7 = vector.load %arg2[%c0_2, %c0_3] : memref<8x1xf32, #tpu.memory_space<vmem>>, vector<8x1xf32>
    tpu.vector_store %arg2[%c0_2, %c0_3], %6 {strides = array<i32>} : memref<8x1xf32, #tpu.memory_space<vmem>>, vector<8x1xf32>,
    return
  }
  func.func @transform_0(%arg0: i32) -> (i32, i32) {
    %c0_i32 = arith.constant 0 : i32
    %c0_i32_0 = arith.constant 0 : i32
    return %arg0, %c0_i32 : i32, i32
  }
  func.func @transform_1(%arg0: i32) -> (i32, i32) {
    %c0_i32 = arith.constant 0 : i32
    %c0_i32_0 = arith.constant 0 : i32
    return %arg0, %c0_i32 : i32, i32
  }
}

</mosaic_0001>

<bundles_post_ra>
// kernel: tpu_custom_call.1
= control target key start
LH: loop header
LB: loop body
LE: loop exit
PB: predicated region body
PF: predicated region fallthrough
CT: control target
= control target key end

     0   :  { %6 = vsyncpa [#allocation3], 0  ;;  %s62_s6 = smov [#allocation2]   ;;  %s88_s0 = inlined_call_operand.hbm [shape: f32[8,32], index: 0, kind: input, shape index: {}]   ;;  %s89_s1 = inlined_call_operand.vmem [shape: f32[8,1], index: 1, kind: output, shape index: {}]  }
   0x1   :  { %s13_s7 = sshll.u32 %s62_s6, 4  ;;  %s38_s10 = scalar_lea.hbm %s88_s0, 128  ;;  %s14_s7 = int_to_ptr.vmem [resolvable:$true] %s13_s7 }
   0x2   :  { %p39_p0 = scmp.ne.s32.totalorder %s88_s0, %s38_s10  ;;  %p42_p1 = scmp.lt.u32.totalorder %s38_s10, %s88_s0 }
   0x4   :  { %p44_p2 = pnand %p42_p1, %p39_p0 }
   0x6   :  { %47 = shalt.err (!%p44_p2)
}
   0x7   :  { %s48_s15 = scalar_lea.vmem %s14_s7, 128  ;;  %p53_p4 = scmp.lt.s32.totalorder %s14_s7, %s14_s7 }
   0x8   :  { %p49_p3 = scmp.ne.s32.totalorder %s14_s7, %s48_s15  ;;  %p54_p5 = scmp.lt.s32.totalorder %s48_s15, %s48_s15 }
   0xa   :  { %p55_p6 = por %p54_p5, %p53_p4 }
   0xc   :  { %p56_p7 = pnand %p55_p6, %p49_p3 }
   0xe   :  { %59 = shalt.err (!%p56_p7)
}
   0xf   :  { %16 = dma.hbm_to_vmem [thread:$0]  %s88_s0, 128, %s14_s7, [#allocation3]  }
  0x10   :  { %60 = dma.done.wait [#allocation3], 128  }
  0x11   :  { %61 = vsyncadd [#allocation3], 4294967168  ;;  %v20_v0 = vld [vmem:[#allocation2] sm:$0xff]  ;;  %vm22_vm0 = vcmask 261120   ;;  %vm28_vm1 = vcmask 7168  }
  0x12   :  { %v21_v1 = vmul.f32 %v20_v0, %v20_v0 }
  0x14   :  { %v23_v2 = vsel %vm22_vm0, %v21_v1, 0.0 }
  0x15   :  { %24 = vadd.xlane.f32.xlu0 %v23_v2 }
  0xa2   :  { %v25_v3 = vpop.xlane.xlu0 %24 }
  0xa3   :  { %v26_v4 = vmax.f32 %v25_v3, 1e-24 }
  0xa5   :  { %36 = vrsqrt.f32 %v26_v4 }
  0xaf   :  { %v37_v5 = vpop.eup %36 }
  0xb0   :  { %29 = vst.msk [vmem:[%s89_s1] sm:$0xff] %vm28_vm1, %v37_v5 }
  0xb1   :  { %34 = vsyncpa [#allocation3], 1 }

</bundles_post_ra>
